<compile_context>
chip_gen: v5e
topology: v5e:2x2
jax: 0.10.0
libtpu: 0.0.40
codegen_flags: <defaults>
</compile_context>

<pallas_src>
import jax
import jax.numpy as jnp
from jax.experimental import pallas as pl
from jax.experimental.pallas import tpu as pltpu


def _round_up(x, m):
    return ((x + m - 1) // m) * m


def wsgcn_fused_kernel(aw2t_ref, lwt_ref, w_ref, b_ref, x0_ref, o_ref):
    """One (row-block, timestep) grid point of the fused wsgcn stack.

    grid = (row_blocks, timestep); the timestep axis is innermost ("arbitrary"),
    the row-block axis is "parallel" (can feed both TensorCores on v7x).

    aw2t_ref : [N, N]   (adj * weight2)^T, loop-invariant, VMEM-resident
                        (bf16 on v6e/v7x, f32 on v5e)
    lwt_ref  : [N, N]   per-layer weight^T for the current step, streamed as bf16
    w_ref    : [1, N]   per-node scale (f32, broadcast over rows = batch*channels)
    b_ref    : [1, N]   per-node bias  (f32)
    x0_ref   : [TR, N]  initial features for this row block (f32)
    o_ref    : [TR, N]  output block; constant index over the step axis ->
                        VMEM-resident carried state across timesteps.
    """
    @pl.when(pl.program_id(1) == 0)
    def _():
        o_ref[...] = x0_ref[...]

    x = o_ref[...]                                     # carried state (f32)
    # Effective (transposed) adjacency for this layer:
    #  - v6e/v7x: bf16 Hadamard on the VPU (native 16x128 vregs), no extra cast.
    #  - v5e    : lwt upcast to f32 (no bf16 VPU); only product cast at the dot.
    a_t = aw2t_ref[...] * lwt_ref[...].astype(aw2t_ref.dtype)
    # Graph propagation on the MXU: h_prop[r, i] = sum_j A_eff[i, j] * x[r, j].
    h_prop = jnp.dot(x.astype(jnp.bfloat16), a_t.astype(jnp.bfloat16),
                     preferred_element_type=jnp.float32)
    # add_loop: (A + I) @ x == A@x + x ; per-node affine ; residue=1.
    o_ref[...] = (h_prop + x) * w_ref[...] + b_ref[...] + x


def wsgcn_fused(aw2_t, lw_used_t, w_row, b_row, x2d, *, row_block,
                vmem_limit_bytes):
    """Single pallas_call covering all `timestep` layers and all row blocks."""
    t = lw_used_t.shape[0]
    n = aw2_t.shape[0]
    cols = x2d.shape[0]
    nrb = cols // row_block

    adj_itemsize = jnp.dtype(aw2_t.dtype).itemsize
    flops = int(t * (2 * cols * n * n + nrb * n * n + 5 * cols * n))
    bytes_accessed = int(
        adj_itemsize * n * n            # resident (adj*weight2)^T
        + 2 * n * n * t * nrb           # streamed bf16 layer weights (per row block)
        + 2 * 4 * n                     # per-node scale + bias
        + 2 * 4 * cols * n)             # x0 in + y out (f32)

    return pl.pallas_call(
        wsgcn_fused_kernel,
        grid=(nrb, t),
        in_specs=[
            pl.BlockSpec((n, n), lambda r, s: (0, 0)),           # (adj*weight2)^T (resident)
            pl.BlockSpec((None, n, n), lambda r, s: (s, 0, 0)),  # layer weight^T  (streamed bf16)
            pl.BlockSpec((1, n), lambda r, s: (0, 0)),           # per-node scale  (resident)
            pl.BlockSpec((1, n), lambda r, s: (0, 0)),           # per-node bias   (resident)
            pl.BlockSpec((row_block, n), lambda r, s: (r, 0)),   # x0 row block    (resident per r)
        ],
        out_specs=pl.BlockSpec((row_block, n), lambda r, s: (r, 0)),  # carried state / output
        out_shape=jax.ShapeDtypeStruct((cols, n), jnp.float32),
        compiler_params=pltpu.CompilerParams(
            dimension_semantics=("parallel", "arbitrary"),       # rows parallel, steps carry
            vmem_limit_bytes=int(vmem_limit_bytes)),
        cost_estimate=pl.CostEstimate(
            flops=flops, transcendentals=0, bytes_accessed=bytes_accessed),
    )(aw2_t, lw_used_t, w_row, b_row, x2d)


def init_params(key, num_nodes, multi=1, stepnum=2, initial_gain=0.1,
                weight_mask=None):
    """Deterministic xavier_normal_-style init matching reset_parameters()."""
    k1, k2, k3 = jax.random.split(key, 3)
    std_w = initial_gain * (2.0 / (num_nodes + multi)) ** 0.5
    weight = (std_w * jax.random.normal(k1, (num_nodes, multi))).astype(jnp.float32)
    std_w2 = initial_gain * (2.0 / (num_nodes + num_nodes)) ** 0.5
    weight2 = (std_w2 * jax.random.normal(k2, (num_nodes, num_nodes))).astype(jnp.float32)
    bias = jnp.zeros((num_nodes, 1), jnp.float32)
    # nonsharing=1: one internal (masked) weight per step.
    layer_w = (std_w2 * jax.random.normal(k3, (stepnum, num_nodes, num_nodes))
               ).astype(jnp.float32)
    if weight_mask is not None:
        # TODO(synk): mask applied at init only; if wsgcn_multi re-masks inside
        # forward, re-apply the mask in wsgcn_multi_net_forward as well.
        layer_w = layer_w * weight_mask[None, :, :].astype(jnp.float32)
    return dict(weight=weight, weight2=weight2, bias=bias, layer_w=layer_w)


def _tpu_generation():
    """Best-effort device-kind sniff; returns 'v5e', 'v7' or 'other'."""
    try:
        kind = jax.devices()[0].device_kind.lower()
    except Exception:
        return "other"
    if "v7" in kind:
        return "v7"
    if "v5e" in kind or "v5 lite" in kind or "v5litepod" in kind:
        return "v5e"
    return "other"


def wsgcn_multi_net_forward(params, adj, x, timestep=1):
    """Mirrors wsgcn_multi_net.forward (nonsharing=1, dropout=0, residue=1)."""
    b, n, c = x.shape
    assert params["weight"].shape[1] == 1, "multi > 1 not supported"  # see TODO above
    stepnum = params["layer_w"].shape[0]
    assert 1 <= timestep <= stepnum, (
        f"timestep={timestep} must be in [1, stepnum={stepnum}]")

    gen = _tpu_generation()
    # bf16 Hadamard on v6e/v7x (native bf16 VPU); keep it f32 on v5e.
    hadamard_dtype = jnp.float32 if gen == "v5e" else jnp.bfloat16
    # Explicit scoped-VMEM budget (defaults 16/32 MiB are too tight at real N);
    # leave headroom vs. physical VMEM (v7x has only 64 MiB).
    vmem_limit = (48 << 20) if gen == "v7" else (100 << 20)

    # Lane-dense layout: [B, N, C] -> [B*C, N]  (node dim on the lane axis).
    cols = b * c
    xk = jnp.transpose(x, (0, 2, 1)).reshape(cols, n)

    # Pad N to a multiple of 128 (unmasked lane-dense stores / legal tiling) and
    # cols to a multiple of 8 (full sublanes). Use 2 row blocks (>= 8 rows each)
    # when possible so the "parallel" axis can feed both TensorCores on v7x.
    n_pad = _round_up(n, 128)
    cols_pad = _round_up(cols, 8)
    nrb = 2 if cols_pad >= 16 else 1
    cols_pad = _round_up(cols_pad, 8 * nrb)
    row_block = cols_pad // nrb

    # Zero padding is exact: padded adjacency rows/cols, scale and bias are zero,
    # so real rows/lanes are unaffected across all timesteps.
    xk = jnp.pad(xk, ((0, cols_pad - cols), (0, n_pad - n)))

    # Loop-invariant weighted adjacency, precomputed once and pre-transposed so
    # the kernel computes x @ A_eff^T with no in-kernel transpose.
    aw2_t = (adj * params["weight2"]).T
    aw2_t = jnp.pad(aw2_t, ((0, n_pad - n), (0, n_pad - n))).astype(hadamard_dtype)

    # Layers actually applied: convs[0 .. timestep-2] then convs[-1].
    lw = params["layer_w"]
    lw_used = jnp.concatenate([lw[: timestep - 1], lw[-1:]], axis=0)  # (timestep, N, N)
    lw_used_t = jnp.swapaxes(lw_used, -1, -2)
    # Streamed in bf16: halves HBM bytes of the only large per-step tensor and
    # halves its double-buffer VMEM footprint.
    lw_used_t = jnp.pad(
        lw_used_t, ((0, 0), (0, n_pad - n), (0, n_pad - n))).astype(jnp.bfloat16)

    w_row = jnp.pad(params["weight"].reshape(1, n), ((0, 0), (0, n_pad - n)))
    b_row = jnp.pad(params["bias"].reshape(1, n), ((0, 0), (0, n_pad - n)))

    yk = wsgcn_fused(aw2_t, lw_used_t, w_row, b_row, xk,
                     row_block=row_block, vmem_limit_bytes=vmem_limit)
    # dropout(p=0) between layers -> identity.

    # Slice off padding: [cols_pad, N_pad] -> [B, N, C].
    yk = yk[:cols, :n]
    return jnp.transpose(yk.reshape(b, c, n), (0, 2, 1))


if __name__ == "__main__":
    key = jax.random.PRNGKey(0)
    B, N, C = 2, 16, 1          # batch, num_nodes, in_channels
    STEPNUM = 2
    ka, kx, kp = jax.random.split(key, 3)

    # Synthetic structural connectivity (symmetric, non-negative) -> C_resting stand-in.
    adj = jax.random.uniform(ka, (N, N), jnp.float32)
    adj = 0.5 * (adj + adj.T)
    weight_mask = adj != 0.0     # weight_mask = mean(C_data, 0) != 0

    x = jax.random.normal(kx, (B, N, C), jnp.float32)
    params = init_params(kp, N, multi=1, stepnum=STEPNUM,
                         initial_gain=0.1, weight_mask=weight_mask)

    fwd = jax.jit(wsgcn_multi_net_forward, static_argnames=("timestep",))
    out = fwd(params, adj, x, timestep=STEPNUM)
    jax.block_until_ready(out)
    assert out.shape == (B, N, C) and out.dtype == jnp.float32
    assert bool(jnp.all(jnp.isfinite(out)))
    print("KERNEL_OK")
</pallas_src>

<mosaic_0001>
module attributes {stable_mosaic.version = 11 : i64} {
  func.func @wsgcn_fused_kernel(%arg0: i32, %arg1: i32, %arg2: memref<128x128xbf16, #tpu.memory_space<vmem>>, %arg3: memref<1x128x128xbf16, #tpu.memory_space<vmem>>, %arg4: memref<1x128xf32, #tpu.memory_space<vmem>>, %arg5: memref<1x128xf32, #tpu.memory_space<vmem>>, %arg6: memref<8x128xf32, #tpu.memory_space<vmem>>, %arg7: memref<8x128xf32, #tpu.memory_space<vmem>>) attributes {dimension_semantics = [#tpu.dimension_semantics<parallel>, #tpu.dimension_semantics<arbitrary>], iteration_bounds = array<i64: 1, 2>, scalar_prefetch = 0 : i64, scratch_operands = 0 : i64, tpu.core_type = #tpu.core_type<tc>, window_params = [{pipeline_mode = #tpu.pipeline_mode<synchronous>, transform_indices = @transform_0, window_bounds = array<i64: 128, 128>}, {transform_indices = @transform_1, window_bounds = array<i64: 1, 128, 128>}, {pipeline_mode = #tpu.pipeline_mode<synchronous>, transform_indices = @transform_2, window_bounds = array<i64: 1, 128>}, {pipeline_mode = #tpu.pipeline_mode<synchronous>, transform_indices = @transform_3, window_bounds = array<i64: 1, 128>}, {transform_indices = @transform_4, window_bounds = array<i64: 8, 128>}, {transform_indices = @transform_5, window_bounds = array<i64: 8, 128>}]} {
    %c0_i32 = arith.constant 0 : i32
    %0 = arith.cmpi eq, %arg1, %c0_i32 : i32
    %1 = arith.extui %0 : i1 to i32
    %c0_i32_0 = arith.constant 0 : i32
    %2 = arith.cmpi ne, %1, %c0_i32_0 : i32
    scf.if %2 {
      %c0_13 = arith.constant 0 : index
      %c0_14 = arith.constant 0 : index
      %19 = vector.load %arg6[%c0_13, %c0_14] : memref<8x128xf32, #tpu.memory_space<vmem>>, vector<8x128xf32>
      %c0_15 = arith.constant 0 : index
      %c0_16 = arith.constant 0 : index
      %20 = vector.load %arg7[%c0_15, %c0_16] : memref<8x128xf32, #tpu.memory_space<vmem>>, vector<8x128xf32>
      tpu.vector_store %arg7[%c0_15, %c0_16], %19 {strides = array<i32>} : memref<8x128xf32, #tpu.memory_space<vmem>>, vector<8x128xf32>,
    } else {
    }
    %c0 = arith.constant 0 : index
    %c0_1 = arith.constant 0 : index
    %3 = vector.load %arg7[%c0, %c0_1] : memref<8x128xf32, #tpu.memory_space<vmem>>, vector<8x128xf32>
    %c0_2 = arith.constant 0 : index
    %c0_3 = arith.constant 0 : index
    %4 = vector.load %arg2[%c0_2, %c0_3] : memref<128x128xbf16, #tpu.memory_space<vmem>>, vector<128x128xbf16>
    %c0_4 = arith.constant 0 : index
    %c0_5 = arith.constant 0 : index
    %c0_6 = arith.constant 0 : index
    %5 = vector.load %arg3[%c0_4, %c0_5, %c0_6] : memref<1x128x128xbf16, #tpu.memory_space<vmem>>, vector<1x128x128xbf16>
    %6 = vector.shape_cast %5 : vector<1x128x128xbf16> to vector<128x128xbf16>
    %7 = arith.mulf %4, %6 : vector<128x128xbf16>
    %8 = arith.truncf %3 : vector<8x128xf32> to vector<8x128xbf16>
    %cst = arith.constant dense<0.000000e+00> : vector<8x128xf32>
    %9 = tpu.matmul %8, %7, %cst {dimension_numbers = #tpu.dot_dimension_numbers<[1], [0], [0], [1], [0, 0, 1, 1], [], []>} : vector<8x128xbf16>, vector<128x128xbf16>, vector<8x128xf32> -> vector<8x128xf32>
    %10 = arith.addf %9, %3 : vector<8x128xf32>
    %c0_7 = arith.constant 0 : index
    %c0_8 = arith.constant 0 : index
    %11 = vector.load %arg4[%c0_7, %c0_8] : memref<1x128xf32, #tpu.memory_space<vmem>>, vector<1x128xf32>
    %12 = vector.broadcast %11 : vector<1x128xf32> to vector<8x128xf32>
    %13 = arith.mulf %10, %12 : vector<8x128xf32>
    %c0_9 = arith.constant 0 : index
    %c0_10 = arith.constant 0 : index
    %14 = vector.load %arg5[%c0_9, %c0_10] : memref<1x128xf32, #tpu.memory_space<vmem>>, vector<1x128xf32>
    %15 = vector.broadcast %14 : vector<1x128xf32> to vector<8x128xf32>
    %16 = arith.addf %13, %15 : vector<8x128xf32>
    %17 = arith.addf %16, %3 : vector<8x128xf32>
    %c0_11 = arith.constant 0 : index
    %c0_12 = arith.constant 0 : index
    %18 = vector.load %arg7[%c0_11, %c0_12] : memref<8x128xf32, #tpu.memory_space<vmem>>, vector<8x128xf32>
    tpu.vector_store %arg7[%c0_11, %c0_12], %17 {strides = array<i32>} : memref<8x128xf32, #tpu.memory_space<vmem>>, vector<8x128xf32>,
    return
  }
  func.func @transform_0(%arg0: i32, %arg1: i32) -> (i32, i32) {
    %c0_i32 = arith.constant 0 : i32
    %c0_i32_0 = arith.constant 0 : i32
    %c0_i32_1 = arith.constant 0 : i32
    return %c0_i32, %c0_i32_0 : i32, i32
  }
  func.func @transform_1(%arg0: i32, %arg1: i32) -> (i32, i32, i32) {
    %c0_i32 = arith.constant 0 : i32
    %c0_i32_0 = arith.constant 0 : i32
    %c0_i32_1 = arith.constant 0 : i32
    return %arg1, %c0_i32, %c0_i32_0 : i32, i32, i32
  }
  func.func @transform_2(%arg0: i32, %arg1: i32) -> (i32, i32) {
    %c0_i32 = arith.constant 0 : i32
    %c0_i32_0 = arith.constant 0 : i32
    %c0_i32_1 = arith.constant 0 : i32
    return %c0_i32, %c0_i32_0 : i32, i32
  }
  func.func @transform_3(%arg0: i32, %arg1: i32) -> (i32, i32) {
    %c0_i32 = arith.constant 0 : i32
    %c0_i32_0 = arith.constant 0 : i32
    %c0_i32_1 = arith.constant 0 : i32
    return %c0_i32, %c0_i32_0 : i32, i32
  }
  func.func @transform_4(%arg0: i32, %arg1: i32) -> (i32, i32) {
    %c0_i32 = arith.constant 0 : i32
    %c0_i32_0 = arith.constant 0 : i32
    return %arg0, %c0_i32 : i32, i32
  }
  func.func @transform_5(%arg0: i32, %arg1: i32) -> (i32, i32) {
    %c0_i32 = arith.constant 0 : i32
    %c0_i32_0 = arith.constant 0 : i32
    return %arg0, %c0_i32 : i32, i32
  }
}

</mosaic_0001>

<bundles_post_ra>
// kernel: wsgcn_multi_net_forward.1
= control target key start
LH: loop header
LB: loop body
LE: loop exit
PB: predicated region body
PF: predicated region fallthrough
CT: control target
= control target key end

     0   :  { %s617_s18 = smov 0   ;;  %s619_s19 = smov 0   ;;  %s699_s0 = inlined_call_operand.vmem [shape: bf16[128,128], index: 0, kind: input, shape index: {}]   ;;  %s700_s1 = inlined_call_operand.vmem [shape: bf16[2,128,128], index: 1, kind: input, shape index: {}]   ;;  %s701_s2 = inlined_call_operand.vmem [shape: f32[1,128], index: 2, kind: input, shape index: {}]   ;;  %s702_s3 = inlined_call_operand.vmem [shape: f32[1,128], index: 3, kind: input, shape index: {}]   ;;  %s703_s4 = inlined_call_operand.vmem [shape: f32[8,128], index: 4, kind: input, shape index: {}]   ;;  %s704_s5 = inlined_call_operand.vmem [shape: f32[8,128], index: 5, kind: output, shape index: {}]  }
   0x1   :  { %s621_s20 = smov 0  }
   0x2 LB: > { %s24_s21 = sadd.s32 1, %s581_s19  ;;  %p451_p0 = scmp.ge.s32.totalorder %s585_s20, 1  ;;  %s585_s20 = sphi %s621_s20, %s15_s20   ;;  %s581_s19 = sphi %s619_s19, %s706_s19   ;;  %s577_s18 = sphi %s617_s18, %s705_s18  }
   0x3   : > { %p25_p1 = scmp.ge.s32.totalorder %s24_s21, 2  ;;  %p208_p2 = scmp.lt.s32.totalorder %s585_s20, 3 }
   0x5   : > { %s708_s21 = smov (%p25_p1, %s24_s21), 0  ;;  %p209_p3 = pnand %p451_p0, %p208_p2 }
   0x6   : > { %p239_p4 = scmp.lt.s32.totalorder (!%p209_p3), %s577_s18, 1  ;;  %p454_p5 = scmp.ne.s32.totalorder (!%p209_p3), %s577_s18, 0 }
   0x7   : > { %212 = sbr.rel (%p209_p3) target bundleno = 194 (0xc2), region = 40 }
   0xc   : > { %s240_s22 = scalar_select %p239_p4, %s577_s18, 1 }
   0xd   : > { %255 = sbr.rel (%p454_p5) target bundleno = 20 (0x14), region = 44 }
   0xe   : > { %s458_s23 = sshll.u32 %s240_s22, 6 }
   0xf   : > { %s638_s26 = scalar_lea.vmem %s700_s1, %s458_s23 }
  0x12   : > { %v256_v0 = vld [vmem:[%s703_s4] sm:$0xff] }
  0x13   : > { %257 = vst [vmem:[%s704_s5] sm:$0xff] %v256_v0 }
  0x14 PF: > { %v529_v1 = vld [vmem:[%s699_s0 + $0x38] sm:$0xff]   ;;  %v528_v3 = vld [vmem:[%s699_s0 + $0x30] sm:$0xff]   ;;  %v527_v9 = vld [vmem:[%s699_s0 + $0x28] sm:$0xff]  }
  0x15   : > { %v536_v2 = vld [vmem:[%s638_s26 + $0x38] sm:$0xff]   ;;  %v489_v4 = vunpack.c.l.bf16 %v529_v1  ;;  %v490_v5 = vunpack.c.h.bf16 %v529_v1  ;;  %v535_v8 = vld [vmem:[%s638_s26 + $0x30] sm:$0xff]   ;;  %v534_v10 = vld [vmem:[%s638_s26 + $0x28] sm:$0xff]   ;;  %v485_v11 = vunpack.c.l.bf16 %v528_v3  ;;  %v486_v12 = vunpack.c.h.bf16 %v528_v3 }
  0x16   : > { %v521_v6 = vunpack.c.l.bf16 %v536_v2  ;;  %v522_v7 = vunpack.c.h.bf16 %v536_v2  ;;  %v517_v13 = vunpack.c.l.bf16 %v535_v8  ;;  %v518_v14 = vunpack.c.h.bf16 %v535_v8  ;;  %v526_v19 = vld [vmem:[%s699_s0 + $0x20] sm:$0xff]   ;;  %v525_v33 = vld [vmem:[%s699_s0 + $0x18] sm:$0xff]   ;;  %v524_v42 = vld [vmem:[%s699_s0 + $0x10] sm:$0xff]  }
  0x17   : > { %v481_v17 = vunpack.c.l.bf16 %v527_v9  ;;  %v482_v18 = vunpack.c.h.bf16 %v527_v9  ;;  %v533_v20 = vld [vmem:[%s638_s26 + $0x20] sm:$0xff]   ;;  %v513_v23 = vunpack.c.l.bf16 %v534_v10  ;;  %v514_v24 = vunpack.c.h.bf16 %v534_v10  ;;  %v532_v34 = vld [vmem:[%s638_s26 + $0x18] sm:$0xff]   ;;  %v531_v43 = vld [vmem:[%s638_s26 + $0x10] sm:$0xff]  }
  0x18   : > { %v337_v15 = vmul.f32 %v521_v6, %v489_v4  ;;  %v338_v16 = vmul.f32 %v522_v7, %v490_v5  ;;  %v335_v21 = vmul.f32 %v517_v13, %v485_v11  ;;  %v336_v22 = vmul.f32 %v518_v14, %v486_v12  ;;  %v523_v51 = vld [vmem:[%s699_s0 + $0x8] sm:$0xff]   ;;  %v460_v60 = vld [vmem:[%s699_s0] sm:$0xff]  }
  0x19   : > { %v477_v26 = vunpack.c.l.bf16 %v526_v19  ;;  %v478_v27 = vunpack.c.h.bf16 %v526_v19  ;;  %v509_v28 = vunpack.c.l.bf16 %v533_v20  ;;  %v333_v30 = vmul.f32 %v513_v23, %v481_v17  ;;  %v530_v52 = vld [vmem:[%s638_s26 + $0x8] sm:$0xff]   ;;  %v492_v61 = vld [vmem:[%s638_s26] sm:$0xff]  }
  0x1a   : > { %v346_v25 = vpack.c.bf16 %v338_v16, %v337_v15  ;;  %v345_v29 = vpack.c.bf16 %v336_v22, %v335_v21  ;;  %v334_v31 = vmul.f32 %v514_v24, %v482_v18  ;;  %v510_v32 = vunpack.c.h.bf16 %v533_v20  ;;  %v258_v9 = vld [vmem:[%s704_s5] sm:$0xff] }
  0x1b   : > { %v331_v35 = vmul.f32 %v509_v28, %v477_v26  ;;  %v473_v36 = vunpack.c.l.bf16 %v525_v33  ;;  %v505_v37 = vunpack.c.l.bf16 %v532_v34  ;;  %v474_v40 = vunpack.c.h.bf16 %v525_v33  ;;  %v561_v11 = vld [vmem:[%s701_s2] ss:$0 sm:$0xff] }
  0x1c   : > { %348 = vmatpush.bf16.msra.mxu0 %v346_v25  ;;  %v344_v38 = vpack.c.bf16 %v334_v31, %v333_v30  ;;  %v332_v39 = vmul.f32 %v510_v32, %v478_v27  ;;  %v506_v41 = vunpack.c.h.bf16 %v532_v34  ;;  %v469_v45 = vunpack.c.l.bf16 %v524_v42  ;;  %v562_v14 = vld [vmem:[%s702_s3] ss:$0 sm:$0xff] }
  0x1d   : > { %v329_v44 = vmul.f32 %v505_v37, %v473_v36  ;;  %v501_v46 = vunpack.c.l.bf16 %v531_v43  ;;  %v470_v49 = vunpack.c.h.bf16 %v524_v42  ;;  %v502_v50 = vunpack.c.h.bf16 %v531_v43 }
  0x1e   : > { %v343_v47 = vpack.c.bf16 %v332_v39, %v331_v35  ;;  %v330_v48 = vmul.f32 %v506_v41, %v474_v40  ;;  %v465_v54 = vunpack.c.l.bf16 %v523_v51  ;;  %v466_v55 = vunpack.c.h.bf16 %v523_v51 }
  0x1f   : > { %v327_v53 = vmul.f32 %v501_v46, %v469_v45  ;;  %v328_v57 = vmul.f32 %v502_v50, %v470_v49  ;;  %v497_v58 = vunpack.c.l.bf16 %v530_v52  ;;  %v498_v59 = vunpack.c.h.bf16 %v530_v52 }
  0x20   : > { %349 = vmatpush.bf16.msra.mxu0 %v345_v29  ;;  %v342_v56 = vpack.c.bf16 %v330_v48, %v329_v44  ;;  %v461_v62 = vunpack.c.l.bf16 %v460_v60  ;;  %v462_v63 = vunpack.c.h.bf16 %v460_v60  ;;  %v493_v0 = vunpack.c.l.bf16 %v492_v61 }
  0x21   : > { %v341_v1 = vpack.c.bf16 %v328_v57, %v327_v53  ;;  %v325_v2 = vmul.f32 %v497_v58, %v465_v54  ;;  %v326_v3 = vmul.f32 %v498_v59, %v466_v55  ;;  %v494_v4 = vunpack.c.h.bf16 %v492_v61 }
  0x22   : > { %v323_v6 = vmul.f32 %v493_v0, %v461_v62  ;;  %v347_v10 = vpack.c.bf16 %v258_v9, %v258_v9 }
  0x23   : > { %v340_v5 = vpack.c.bf16 %v326_v3, %v325_v2  ;;  %v324_v7 = vmul.f32 %v494_v4, %v462_v63 }
  0x24   : > { %350 = vmatpush.bf16.msra.mxu0 %v344_v38 }
  0x25   : > { %v339_v8 = vpack.c.bf16 %v324_v7, %v323_v6 }
  0x28   : > { %351 = vmatpush.bf16.msra.mxu0 %v343_v47 }
  0x2c   : > { %352 = vmatpush.bf16.msra.mxu0 %v342_v56 }
  0x30   : > { %353 = vmatpush.bf16.msra.mxu0 %v341_v1 }
  0x34   : > { %354 = vmatpush.bf16.msra.mxu0 %v340_v5 }
  0x38   : > { %355 = vmatpush.bf16.msra.mxu0 %v339_v8 }
  0x3b   : > { %356 = vmatmul.bf16.vlgmr.msra.gmra.mxu0 %v347_v10 }
  0xb8   : > { %v357_v12 = vpop.f32.mrf.mxu0 }
  0xb9   : > { %v358_v13 = vadd.f32 %v357_v12, %v258_v9 }
  0xbb   : > { %v365_v15 = vmul.f32 %v561_v11, %v358_v13 }
  0xbd   : > { %v370_v16 = vadd.f32 %v562_v14, %v365_v15 }
  0xbf   : > { %v371_v17 = vadd.f32 %v370_v16, %v258_v9 }
  0xc0   : > { %v359_v18 = vpop.f32.mrf.mxu0 }
  0xc1   : > { %372 = vst [vmem:[%s704_s5] sm:$0xff] %v371_v17 }
  0xc2 PF: > { %s15_s20 = sadd.s32 1, %s585_s20   ;;  %s705_s18 = smov %s581_s19 }
  0xc3   : > { %p12_p6 = scmp.ge.s32.totalorder %s15_s20, 4   ;;  %s706_s19 = smov %s708_s21 }
  0xc5   :  { %14 = sbr.rel (!%p12_p6) target bundleno = 2 (0x2), region = 77 }

</bundles_post_ra>
